<compile_context>
chip_gen: v7x
topology: tpu7x:2x2x1
jax: 0.10.0
libtpu: 0.0.40
codegen_flags: <defaults>
</compile_context>

<pallas_src>
import functools

import numpy as np
import jax
import jax.numpy as jnp
from jax import lax
from jax.experimental import pallas as pl
from jax.experimental.pallas import tpu as pltpu


# ---------------------------------------------------------------------------
# PSP adaptive-average-pool expressed as an (Lp, H*W) matrix (PyTorch
# AdaptiveAvgPool2d bin semantics), zero-padded to `padded_rows` rows.
# ---------------------------------------------------------------------------
def _psp_pool_matrix(h, w, sizes, padded_rows=None):
    rows = []
    for s in sizes:
        for i in range(s):
            rs, re = (i * h) // s, -(-((i + 1) * h) // s)          # floor, ceil
            for j in range(s):
                cs, ce = (j * w) // s, -(-((j + 1) * w) // s)
                m = np.zeros((h, w), np.float32)
                m[rs:re, cs:ce] = 1.0 / float((re - rs) * (ce - cs))
                rows.append(m.reshape(-1))
    pt = np.stack(rows, axis=0)                                    # (L, H*W)
    if padded_rows is not None and padded_rows > pt.shape[0]:
        pt = np.concatenate(
            [pt, np.zeros((padded_rows - pt.shape[0], h * w), np.float32)], axis=0)
    return pt


def _vmem_limit_bytes():
    """VMEM limit derived from the chip (safe fallback = v7x's 64 MiB/TC)."""
    try:
        info = pltpu.get_tpu_info()
        cap = int(getattr(info, "vmem_capacity_bytes", 64 * 1024 * 1024))
    except Exception:
        cap = 64 * 1024 * 1024
    return max(32 * 1024 * 1024, min(int(cap * 0.8), 100 * 1024 * 1024))


def _pick_tile(hw, per_col_bytes, budget_bytes):
    """Largest HW tile that divides hw, is a multiple of 128, fits the budget."""
    if hw % 128 != 0:
        # TODO(synk): non-128-aligned HW falls back to a single full-HW tile.
        return hw
    cap = max(128, (budget_bytes // max(per_col_bytes, 1)) // 128 * 128)
    t = min(cap, hw)
    t -= t % 128
    while t >= 128:
        if hw % t == 0:
            return t
        t -= 128
    return hw


# ---------------------------------------------------------------------------
# Stage 1: fused projection + PSP pooling, accumulated over HW tiles.
#   outputs: q (ReLU'd key/query projection, per-tile, compute_dtype),
#            key^T pooled (Lp, Kc) partial sums, value pooled (Vc, Lp) partials.
# ---------------------------------------------------------------------------
def _pool_kernel(x_ref, pt_ref, wkv_ref, bkv_ref, q_ref, keyt_ref, val_ref, *,
                 key_channels):
    kc = key_channels
    cd = pt_ref.dtype

    # Fused f_key/f_query + f_value projection: one (Kc+Vc, Cin) @ (Cin, tp).
    kv = jnp.dot(wkv_ref[...], x_ref[...],
                 preferred_element_type=jnp.float32) + bkv_ref[...]      # (Kc+Vc, tp)
    k_part = jnp.maximum(kv[:kc, :], 0.0)          # ReLU only on key/query rows
    v_part = kv[kc:, :]                            # f_value: no BN/ReLU

    # Emit q for reuse by stage 2 (removes stage-2's projection matmul).
    q_ref[...] = k_part.astype(q_ref.dtype)

    # Partial adaptive-avg-pool for this HW tile (operands in compute dtype).
    keyt_part = lax.dot_general(pt_ref[...], k_part.astype(cd),
                                (((1,), (1,)), ((), ())),
                                preferred_element_type=jnp.float32)      # (Lp, Kc)
    val_part = lax.dot_general(v_part.astype(cd), pt_ref[...],
                               (((1,), (1,)), ((), ())),
                               preferred_element_type=jnp.float32)       # (Vc, Lp)

    @pl.when(pl.program_id(2) == 0)
    def _():
        keyt_ref[...] = jnp.zeros_like(keyt_ref)
        val_ref[...] = jnp.zeros_like(val_ref)

    keyt_ref[...] += keyt_part
    val_ref[...] += val_part


# ---------------------------------------------------------------------------
# Stage 2: attention of each HW tile against the pooled keys/values.
# ---------------------------------------------------------------------------
def _attn_kernel(q_ref, keyt_ref, val_ref, mask_ref, ww_ref, bw_ref, o_ref):
    cd = keyt_ref.dtype
    q = q_ref[...]                                                       # (Kc, tq)

    # sim^T[l, t] = sum_k key_scaled[l, k] * q[k, t]   (compute-dtype MXU matmul)
    sim = jnp.dot(keyt_ref[...], q, preferred_element_type=jnp.float32)  # (Lp, tq)
    sim = sim + mask_ref[...]                      # additive -1e30 on padded rows

    # Softmax over the pooled axis; normalisation deferred past the PV matmul
    # and done with the EUP approximate reciprocal (no divides).
    p = jnp.exp(sim - jnp.max(sim, axis=0, keepdims=True))               # (Lp, tq)
    denom = jnp.sum(p, axis=0, keepdims=True)                            # (1, tq)

    ctx = jnp.dot(val_ref[...], p.astype(cd),
                  preferred_element_type=jnp.float32)                    # (Vc, tq)
    ctx = ctx * pl.reciprocal(denom, approx=True)

    # Final W: 1x1 conv (zero-initialised per the module spec).
    out = jnp.dot(ww_ref[...], ctx.astype(cd),
                  preferred_element_type=jnp.float32) + bw_ref[...]      # (Cout, tq)
    o_ref[...] = out.astype(o_ref.dtype)


# ---------------------------------------------------------------------------
# Wrapper
# ---------------------------------------------------------------------------
def self_attention_block(x_nchw, params, *, key_channels, value_channels,
                         out_channels, scale=1, psp_sizes=(1, 3, 6, 8),
                         compute_dtype=jnp.float32, out_dtype=None,
                         q_tile=None, pool_tile=None, pool_splits=None):
    b, cin, h, w = x_nchw.shape
    if scale > 1:
        # nn.MaxPool2d(kernel_size=(scale, scale)) with stride == kernel size.
        # TODO(synk): assumes H, W divisible by scale (PyTorch floor-mode crop not handled).
        x_nchw = x_nchw.reshape(b, cin, h // scale, scale, w // scale, scale).max(axis=(3, 5))
        h, w = h // scale, w // scale
    hw = h * w
    L = int(sum(s * s for s in psp_sizes))
    Lp = max(128, ((L + 127) // 128) * 128)        # pad pooled axis to full lanes
    kvc = key_channels + value_channels
    out_dtype = compute_dtype if out_dtype is None else out_dtype

    x_tok = x_nchw.reshape(b, cin, hw).astype(compute_dtype)   # channels-first, no transpose
    pt = jnp.asarray(_psp_pool_matrix(h, w, psp_sizes, padded_rows=Lp),
                     dtype=compute_dtype)                      # (Lp, HW)

    wkv = jnp.concatenate([params["wq"], params["wv"]], axis=0).astype(compute_dtype)
    bkv = jnp.concatenate([params["bq"], params["bv"]], axis=0).astype(jnp.float32)
    ww = params["ww"].astype(compute_dtype)
    bw = params["bw"].astype(jnp.float32)

    # ---- VMEM-budget-derived tiles (double-buffered blocks + f32 temporaries)
    cb = jnp.dtype(compute_dtype).itemsize
    ob = jnp.dtype(out_dtype).itemsize
    vmem_limit = _vmem_limit_bytes()
    budget = int(vmem_limit * 0.6)
    s1_per_col = 2 * (cin + Lp + key_channels) * cb + (kvc + Lp + key_channels) * 4
    s2_per_col = (2 * (key_channels * cb + out_channels * ob)
                  + (2 * Lp + value_channels + out_channels + key_channels) * 4)
    tp = pool_tile or _pick_tile(hw, s1_per_col, budget)
    tq = q_tile or _pick_tile(hw, s2_per_col, budget)
    if hw % tp != 0:
        tp = hw
    if hw % tq != 0:
        tq = hw

    ntiles = hw // tp
    if pool_splits is None:
        # Give v7x's second TensorCore work on stage 1 even at batch=1.
        pool_splits = 2 if (b == 1 and ntiles % 2 == 0) else 1
    if ntiles % pool_splits != 0:
        pool_splits = 1
    nps = ntiles // pool_splits

    # ---- stage 1: q projection + pooled [key^T ; value] partial sums --------
    # TODO(synk): if profiling shows exposed DMA on x here, add
    # pipeline_mode=pl.Buffered(3) to the x BlockSpec (account for it in budget).
    pooled_q, keyt_acc, val_acc = pl.pallas_call(
        functools.partial(_pool_kernel, key_channels=key_channels),
        out_shape=(
            jax.ShapeDtypeStruct((b, key_channels, hw), compute_dtype),
            jax.ShapeDtypeStruct((b, pool_splits, Lp, key_channels), jnp.float32),
            jax.ShapeDtypeStruct((b, pool_splits, value_channels, Lp), jnp.float32),
        ),
        grid=(b, pool_splits, nps),
        in_specs=[
            pl.BlockSpec((None, cin, tp), lambda i, s, j: (i, 0, s * nps + j)),
            pl.BlockSpec((Lp, tp), lambda i, s, j: (0, s * nps + j)),
            pl.BlockSpec((kvc, cin), lambda i, s, j: (0, 0)),
            pl.BlockSpec((kvc, 1), lambda i, s, j: (0, 0)),
        ],
        out_specs=(
            pl.BlockSpec((None, key_channels, tp), lambda i, s, j: (i, 0, s * nps + j)),
            pl.BlockSpec((None, None, Lp, key_channels), lambda i, s, j: (i, s, 0, 0)),
            pl.BlockSpec((None, None, value_channels, Lp), lambda i, s, j: (i, s, 0, 0)),
        ),
        compiler_params=pltpu.CompilerParams(
            dimension_semantics=("parallel", "parallel", "arbitrary"),
            vmem_limit_bytes=vmem_limit),
    )(x_tok, pt, wkv, bkv)

    # Reduce the tiny partial-sum slabs, fold the kc^-0.5 scale into the pooled
    # key once (instead of per stage-2 tile), cast pooled tensors for the MXU.
    keyt = (keyt_acc.sum(axis=1) * (float(key_channels) ** -0.5)).astype(compute_dtype)
    val = val_acc.sum(axis=1).astype(compute_dtype)
    # Additive mask column for padded pooled rows (finite, not -inf).
    mask = jnp.where(jnp.arange(Lp) < L, 0.0, -1e30).astype(jnp.float32).reshape(Lp, 1)

    # ---- stage 2: attention, tiled over (B, HW) -----------------------------
    out_tok = pl.pallas_call(
        _attn_kernel,
        out_shape=jax.ShapeDtypeStruct((b, out_channels, hw), out_dtype),
        grid=(b, hw // tq),
        in_specs=[
            pl.BlockSpec((None, key_channels, tq), lambda i, j: (i, 0, j)),
            pl.BlockSpec((None, Lp, key_channels), lambda i, j: (i, 0, 0)),
            pl.BlockSpec((None, value_channels, Lp), lambda i, j: (i, 0, 0)),
            pl.BlockSpec((Lp, 1), lambda i, j: (0, 0)),
            pl.BlockSpec((out_channels, value_channels), lambda i, j: (0, 0)),
            pl.BlockSpec((out_channels, 1), lambda i, j: (0, 0)),
        ],
        out_specs=pl.BlockSpec((None, out_channels, tq), lambda i, j: (i, 0, j)),
        compiler_params=pltpu.CompilerParams(
            dimension_semantics=("parallel", "parallel"),
            vmem_limit_bytes=vmem_limit),
    )(pooled_q, keyt, val, mask, ww, bw)

    return out_tok.reshape(b, out_channels, h, w)


# ---------------------------------------------------------------------------
# Parameters + pure-JAX reference
# ---------------------------------------------------------------------------
def init_params(key, in_channels, key_channels, value_channels, out_channels):
    """Parameters matching the PyTorch module (eval-mode BN folded into f_key)."""
    k1, k2, k3, k4 = jax.random.split(key, 4)
    wk = jax.random.normal(k1, (key_channels, in_channels), jnp.float32) * 0.1
    bk = jax.random.normal(k2, (key_channels, 1), jnp.float32) * 0.05
    wv = jax.random.normal(k3, (value_channels, in_channels), jnp.float32) * 0.1
    bv = jax.random.normal(k4, (value_channels, 1), jnp.float32) * 0.05
    # Fold eval-mode BatchNorm2d (gamma=1, beta=0, mean=0, var=1, eps=1e-5) into f_key.
    bn_scale = 1.0 / np.sqrt(1.0 + 1e-5)
    # W conv: nn.init.constant_(weight, 0) / constant_(bias, 0) per the module spec.
    return dict(wq=wk * bn_scale, bq=bk * bn_scale, wv=wv, bv=bv,
                ww=jnp.zeros((out_channels, value_channels), jnp.float32),
                bw=jnp.zeros((out_channels, 1), jnp.float32))


def reference_forward(x_nchw, params, *, key_channels, value_channels,
                      out_channels, psp_sizes=(1, 3, 6, 8)):
    """Pure-JAX reference mirroring the PyTorch forward (eval-mode BN)."""
    b, cin, h, w = x_nchw.shape
    hw = h * w
    xt = x_nchw.reshape(b, cin, hw).astype(jnp.float32)
    pt = jnp.asarray(_psp_pool_matrix(h, w, psp_sizes))                    # (L, HW)
    q = jnp.maximum(jnp.einsum("kc,bcp->bkp", params["wq"], xt) + params["bq"], 0.0)
    v = jnp.einsum("vc,bcp->bvp", params["wv"], xt) + params["bv"]
    key = jnp.einsum("lp,bkp->bkl", pt, q)
    val = jnp.einsum("lp,bvp->bvl", pt, v)
    sim = jnp.einsum("bkp,bkl->bpl", q, key) * (float(key_channels) ** -0.5)
    sim = jax.nn.softmax(sim, axis=-1)
    ctx = jnp.einsum("bpl,bvl->bvp", sim, val)
    out = jnp.einsum("ov,bvp->bop", params["ww"], ctx) + params["bw"]
    return out.reshape(b, out_channels, h, w)


if __name__ == "__main__":
    B, C_IN, H, W = 2, 16, 16, 16
    KEY_CH, VAL_CH = 8, 8
    OUT_CH = C_IN                                    # out_channels defaults to in_channels

    root = jax.random.PRNGKey(0)
    kx, kp, kw, kb = jax.random.split(root, 4)
    x = jax.random.normal(kx, (B, C_IN, H, W), jnp.float32)       # NCHW, like PyTorch
    params = init_params(kp, C_IN, KEY_CH, VAL_CH, OUT_CH)
    # The module zero-inits W (output would be trivially zero); use a nonzero W/bias
    # here so the softmax / PV / final-conv path is actually exercised by the check.
    params = dict(params,
                  ww=jax.random.normal(kw, (OUT_CH, VAL_CH), jnp.float32) * 0.1,
                  bw=jax.random.normal(kb, (OUT_CH, 1), jnp.float32) * 0.05)

    ref = jax.block_until_ready(reference_forward(
        x, params, key_channels=KEY_CH, value_channels=VAL_CH, out_channels=OUT_CH))

    # f32 run (tolerance covers the EUP approximate reciprocal).
    out = jax.block_until_ready(self_attention_block(
        x, params, key_channels=KEY_CH, value_channels=VAL_CH,
        out_channels=OUT_CH, scale=1))
    assert out.shape == (B, OUT_CH, H, W), out.shape
    assert out.dtype == jnp.float32
    assert np.all(np.isfinite(np.asarray(out)))
    np.testing.assert_allclose(np.asarray(out), np.asarray(ref), rtol=2e-2, atol=5e-3)

    # bf16 path: all MXU matmuls and the output slab in bf16 (f32 accumulation).
    out_bf16 = jax.block_until_ready(self_attention_block(
        x, params, key_channels=KEY_CH, value_channels=VAL_CH,
        out_channels=OUT_CH, scale=1, compute_dtype=jnp.bfloat16))
    assert out_bf16.dtype == jnp.bfloat16
    np.testing.assert_allclose(np.asarray(out_bf16.astype(jnp.float32)),
                               np.asarray(ref), rtol=8e-2, atol=2e-2)

    # batch=1 run exercising the stage-1 parallel split path (v7x megacore).
    out_b1 = jax.block_until_ready(self_attention_block(
        x[:1], params, key_channels=KEY_CH, value_channels=VAL_CH,
        out_channels=OUT_CH, scale=1, pool_tile=128))
    np.testing.assert_allclose(np.asarray(out_b1), np.asarray(ref[:1]),
                               rtol=2e-2, atol=5e-3)

    print("KERNEL_OK")
</pallas_src>

<mosaic_0001>
module attributes {stable_mosaic.version = 11 : i64} {
  func.func @_pool_kernel(%arg0: i32, %arg1: i32, %arg2: i32, %arg3: memref<1x16x256xf32, #tpu.memory_space<vmem>>, %arg4: memref<128x256xf32, #tpu.memory_space<vmem>>, %arg5: memref<16x16xf32, #tpu.memory_space<vmem>>, %arg6: memref<16x1xf32, #tpu.memory_space<vmem>>, %arg7: memref<1x8x256xf32, #tpu.memory_space<vmem>>, %arg8: memref<1x1x128x8xf32, #tpu.memory_space<vmem>>, %arg9: memref<1x1x8x128xf32, #tpu.memory_space<vmem>>) attributes {dimension_semantics = [#tpu.dimension_semantics<parallel>, #tpu.dimension_semantics<parallel>, #tpu.dimension_semantics<arbitrary>], iteration_bounds = array<i64: 2, 1, 1>, scalar_prefetch = 0 : i64, scratch_operands = 0 : i64, tpu.core_type = #tpu.core_type<tc>, window_params = [{transform_indices = @transform_0, window_bounds = array<i64: 1, 16, 256>}, {transform_indices = @transform_1, window_bounds = array<i64: 128, 256>}, {pipeline_mode = #tpu.pipeline_mode<synchronous>, transform_indices = @transform_2, window_bounds = array<i64: 16, 16>}, {pipeline_mode = #tpu.pipeline_mode<synchronous>, transform_indices = @transform_3, window_bounds = array<i64: 16, 1>}, {transform_indices = @transform_4, window_bounds = array<i64: 1, 8, 256>}, {transform_indices = @transform_5, window_bounds = array<i64: 1, 1, 128, 8>}, {transform_indices = @transform_6, window_bounds = array<i64: 1, 1, 8, 128>}]} {
    %c0 = arith.constant 0 : index
    %c0_0 = arith.constant 0 : index
    %0 = vector.load %arg5[%c0, %c0_0] : memref<16x16xf32, #tpu.memory_space<vmem>>, vector<16x16xf32>
    %c0_1 = arith.constant 0 : index
    %c0_2 = arith.constant 0 : index
    %c0_3 = arith.constant 0 : index
    %1 = vector.load %arg3[%c0_1, %c0_2, %c0_3] : memref<1x16x256xf32, #tpu.memory_space<vmem>>, vector<1x16x256xf32>
    %2 = vector.shape_cast %1 : vector<1x16x256xf32> to vector<16x256xf32>
    %cst = arith.constant dense<0.000000e+00> : vector<16x256xf32>
    %3 = tpu.matmul %0, %2, %cst {dimension_numbers = #tpu.dot_dimension_numbers<[1], [0], [0], [1], [0, 0, 1, 1], [], []>} : vector<16x16xf32>, vector<16x256xf32>, vector<16x256xf32> -> vector<16x256xf32>
    %c0_4 = arith.constant 0 : index
    %c0_5 = arith.constant 0 : index
    %4 = vector.load %arg6[%c0_4, %c0_5] : memref<16x1xf32, #tpu.memory_space<vmem>>, vector<16x1xf32>
    %5 = vector.broadcast %4 : vector<16x1xf32> to vector<16x256xf32>
    %6 = arith.addf %3, %5 : vector<16x256xf32>
    %7 = vector.extract_strided_slice %6 {offsets = [0, 0], sizes = [8, 256], strides = [1, 1]} : vector<16x256xf32> to vector<8x256xf32>
    %cst_6 = arith.constant 0.000000e+00 : f32
    %8 = vector.broadcast %cst_6 : f32 to vector<8x256xf32>
    %9 = arith.maximumf %7, %8 : vector<8x256xf32>
    %10 = vector.extract_strided_slice %6 {offsets = [8, 0], sizes = [8, 256], strides = [1, 1]} : vector<16x256xf32> to vector<8x256xf32>
    %c0_7 = arith.constant 0 : index
    %c0_8 = arith.constant 0 : index
    %c0_9 = arith.constant 0 : index
    %11 = vector.load %arg7[%c0_7, %c0_8, %c0_9] : memref<1x8x256xf32, #tpu.memory_space<vmem>>, vector<1x8x256xf32>
    %12 = vector.shape_cast %11 : vector<1x8x256xf32> to vector<8x256xf32>
    %13 = vector.shape_cast %9 : vector<8x256xf32> to vector<1x8x256xf32>
    tpu.vector_store %arg7[%c0_7, %c0_8, %c0_9], %13 {strides = array<i32>} : memref<1x8x256xf32, #tpu.memory_space<vmem>>, vector<1x8x256xf32>,
    %c0_10 = arith.constant 0 : index
    %c0_11 = arith.constant 0 : index
    %14 = vector.load %arg4[%c0_10, %c0_11] : memref<128x256xf32, #tpu.memory_space<vmem>>, vector<128x256xf32>
    %cst_12 = arith.constant dense<0.000000e+00> : vector<128x8xf32>
    %15 = tpu.matmul %14, %9, %cst_12 {dimension_numbers = #tpu.dot_dimension_numbers<[1], [1], [0], [0], [0, 0, 1, 0], [], []>} : vector<128x256xf32>, vector<8x256xf32>, vector<128x8xf32> -> vector<128x8xf32>
    %c0_13 = arith.constant 0 : index
    %c0_14 = arith.constant 0 : index
    %16 = vector.load %arg4[%c0_13, %c0_14] : memref<128x256xf32, #tpu.memory_space<vmem>>, vector<128x256xf32>
    %cst_15 = arith.constant dense<0.000000e+00> : vector<8x128xf32>
    %17 = tpu.matmul %10, %16, %cst_15 {dimension_numbers = #tpu.dot_dimension_numbers<[1], [1], [0], [0], [0, 0, 1, 0], [], []>} : vector<8x256xf32>, vector<128x256xf32>, vector<8x128xf32> -> vector<8x128xf32>
    %c0_i32 = arith.constant 0 : i32
    %18 = arith.cmpi eq, %arg2, %c0_i32 : i32
    %19 = arith.extui %18 : i1 to i32
    %c0_i32_16 = arith.constant 0 : i32
    %20 = arith.cmpi ne, %19, %c0_i32_16 : i32
    scf.if %20 {
      %cst_33 = arith.constant 0.000000e+00 : f32
      %33 = vector.broadcast %cst_33 : f32 to vector<128x8xf32>
      %c0_34 = arith.constant 0 : index
      %c0_35 = arith.constant 0 : index
      %c0_36 = arith.constant 0 : index
      %c0_37 = arith.constant 0 : index
      %34 = vector.load %arg8[%c0_34, %c0_35, %c0_36, %c0_37] : memref<1x1x128x8xf32, #tpu.memory_space<vmem>>, vector<1x1x128x8xf32>
      %35 = vector.shape_cast %34 : vector<1x1x128x8xf32> to vector<128x8xf32>
      %36 = vector.shape_cast %33 : vector<128x8xf32> to vector<1x1x128x8xf32>
      tpu.vector_store %arg8[%c0_34, %c0_35, %c0_36, %c0_37], %36 {strides = array<i32>} : memref<1x1x128x8xf32, #tpu.memory_space<vmem>>, vector<1x1x128x8xf32>,
      %cst_38 = arith.constant 0.000000e+00 : f32
      %37 = vector.broadcast %cst_38 : f32 to vector<8x128xf32>
      %c0_39 = arith.constant 0 : index
      %c0_40 = arith.constant 0 : index
      %c0_41 = arith.constant 0 : index
      %c0_42 = arith.constant 0 : index
      %38 = vector.load %arg9[%c0_39, %c0_40, %c0_41, %c0_42] : memref<1x1x8x128xf32, #tpu.memory_space<vmem>>, vector<1x1x8x128xf32>
      %39 = vector.shape_cast %38 : vector<1x1x8x128xf32> to vector<8x128xf32>
      %40 = vector.shape_cast %37 : vector<8x128xf32> to vector<1x1x8x128xf32>
      tpu.vector_store %arg9[%c0_39, %c0_40, %c0_41, %c0_42], %40 {strides = array<i32>} : memref<1x1x8x128xf32, #tpu.memory_space<vmem>>, vector<1x1x8x128xf32>,
    } else {
    }
    %c0_17 = arith.constant 0 : index
    %c0_18 = arith.constant 0 : index
    %c0_19 = arith.constant 0 : index
    %c0_20 = arith.constant 0 : index
    %21 = vector.load %arg8[%c0_17, %c0_18, %c0_19, %c0_20] : memref<1x1x128x8xf32, #tpu.memory_space<vmem>>, vector<1x1x128x8xf32>
    %22 = vector.shape_cast %21 : vector<1x1x128x8xf32> to vector<128x8xf32>
    %23 = arith.addf %22, %15 : vector<128x8xf32>
    %c0_21 = arith.constant 0 : index
    %c0_22 = arith.constant 0 : index
    %c0_23 = arith.constant 0 : index
    %c0_24 = arith.constant 0 : index
    %24 = vector.load %arg8[%c0_21, %c0_22, %c0_23, %c0_24] : memref<1x1x128x8xf32, #tpu.memory_space<vmem>>, vector<1x1x128x8xf32>
    %25 = vector.shape_cast %24 : vector<1x1x128x8xf32> to vector<128x8xf32>
    %26 = vector.shape_cast %23 : vector<128x8xf32> to vector<1x1x128x8xf32>
    tpu.vector_store %arg8[%c0_21, %c0_22, %c0_23, %c0_24], %26 {strides = array<i32>} : memref<1x1x128x8xf32, #tpu.memory_space<vmem>>, vector<1x1x128x8xf32>,
    %c0_25 = arith.constant 0 : index
    %c0_26 = arith.constant 0 : index
    %c0_27 = arith.constant 0 : index
    %c0_28 = arith.constant 0 : index
    %27 = vector.load %arg9[%c0_25, %c0_26, %c0_27, %c0_28] : memref<1x1x8x128xf32, #tpu.memory_space<vmem>>, vector<1x1x8x128xf32>
    %28 = vector.shape_cast %27 : vector<1x1x8x128xf32> to vector<8x128xf32>
    %29 = arith.addf %28, %17 : vector<8x128xf32>
    %c0_29 = arith.constant 0 : index
    %c0_30 = arith.constant 0 : index
    %c0_31 = arith.constant 0 : index
    %c0_32 = arith.constant 0 : index
    %30 = vector.load %arg9[%c0_29, %c0_30, %c0_31, %c0_32] : memref<1x1x8x128xf32, #tpu.memory_space<vmem>>, vector<1x1x8x128xf32>
    %31 = vector.shape_cast %30 : vector<1x1x8x128xf32> to vector<8x128xf32>
    %32 = vector.shape_cast %29 : vector<8x128xf32> to vector<1x1x8x128xf32>
    tpu.vector_store %arg9[%c0_29, %c0_30, %c0_31, %c0_32], %32 {strides = array<i32>} : memref<1x1x8x128xf32, #tpu.memory_space<vmem>>, vector<1x1x8x128xf32>,
    return
  }
  func.func @transform_0(%arg0: i32, %arg1: i32, %arg2: i32) -> (i32, i32, i32) {
    %c1_i32 = arith.constant 1 : i32
    %0 = arith.muli %arg1, %c1_i32 : i32
    %1 = arith.addi %0, %arg2 : i32
    %c0_i32 = arith.constant 0 : i32
    %c0_i32_0 = arith.constant 0 : i32
    return %arg0, %c0_i32, %1 : i32, i32, i32
  }
  func.func @transform_1(%arg0: i32, %arg1: i32, %arg2: i32) -> (i32, i32) {
    %c1_i32 = arith.constant 1 : i32
    %0 = arith.muli %arg1, %c1_i32 : i32
    %1 = arith.addi %0, %arg2 : i32
    %c0_i32 = arith.constant 0 : i32
    %c0_i32_0 = arith.constant 0 : i32
    return %c0_i32, %1 : i32, i32
  }
  func.func @transform_2(%arg0: i32, %arg1: i32, %arg2: i32) -> (i32, i32) {
    %c0_i32 = arith.constant 0 : i32
    %c0_i32_0 = arith.constant 0 : i32
    %c0_i32_1 = arith.constant 0 : i32
    return %c0_i32, %c0_i32_0 : i32, i32
  }
  func.func @transform_3(%arg0: i32, %arg1: i32, %arg2: i32) -> (i32, i32) {
    %c0_i32 = arith.constant 0 : i32
    %c0_i32_0 = arith.constant 0 : i32
    %c0_i32_1 = arith.constant 0 : i32
    return %c0_i32, %c0_i32_0 : i32, i32
  }
  func.func @transform_4(%arg0: i32, %arg1: i32, %arg2: i32) -> (i32, i32, i32) {
    %c1_i32 = arith.constant 1 : i32
    %0 = arith.muli %arg1, %c1_i32 : i32
    %1 = arith.addi %0, %arg2 : i32
    %c0_i32 = arith.constant 0 : i32
    %c0_i32_0 = arith.constant 0 : i32
    return %arg0, %c0_i32, %1 : i32, i32, i32
  }
  func.func @transform_5(%arg0: i32, %arg1: i32, %arg2: i32) -> (i32, i32, i32, i32) {
    %c0_i32 = arith.constant 0 : i32
    %c0_i32_0 = arith.constant 0 : i32
    %c0_i32_1 = arith.constant 0 : i32
    return %arg0, %arg1, %c0_i32, %c0_i32_0 : i32, i32, i32, i32
  }
  func.func @transform_6(%arg0: i32, %arg1: i32, %arg2: i32) -> (i32, i32, i32, i32) {
    %c0_i32 = arith.constant 0 : i32
    %c0_i32_0 = arith.constant 0 : i32
    %c0_i32_1 = arith.constant 0 : i32
    return %arg0, %arg1, %c0_i32, %c0_i32_0 : i32, i32, i32, i32
  }
}

</mosaic_0001>

<bundles_post_ra>
// kernel: tpu_custom_call.1
= control target key start
LH: loop header
LB: loop body
LE: loop exit
PB: predicated region body
PF: predicated region fallthrough
CT: control target
= control target key end

     0   :  { %12 = vsyncpa [#allocation3], 0  ;;  %s1841_s0 = inlined_call_operand.hbm [shape: f32[2,16,256], index: 0, kind: input, shape index: {}]   ;;  %s1842_s1 = inlined_call_operand.hbm [shape: f32[128,256], index: 1, kind: input, shape index: {}]   ;;  %s1843_s2 = inlined_call_operand.vmem [shape: f32[16,16], index: 2, kind: input, shape index: {}]   ;;  %s1844_s3 = inlined_call_operand.vmem [shape: f32[16,1], index: 3, kind: input, shape index: {}]   ;;  %s1845_s4 = inlined_call_operand.hbm [shape: f32[2,8,256], index: 4, kind: output, shape index: {0}]   ;;  %s1846_s5 = inlined_call_operand.vmem [shape: f32[2,1,128,8], index: 5, kind: output, shape index: {1}]   ;;  %s1847_s6 = inlined_call_operand.hbm [shape: f32[2,1,8,128], index: 6, kind: output, shape index: {2}]  }
   0x1   :  { %14 = vsyncpa [#allocation3 + $0x1], 0 }
   0x2   :  { %15 = vsyncpa [#allocation6], 0 }
   0x3   :  { %16 = vsyncpa [#allocation4], 0 }
   0x4   :  { %18 = vsyncpa [#allocation4 + $0x1], 0 }
   0x5   :  { %19 = vsyncpa [#allocation9], 0 }
   0x6   :  { %21 = vsyncpa [#allocation9 + $0x1], 0  ;;  %s1386_s21 = smov 0   ;;  %s1388_s22 = smov 0  }
   0x7   :  { %s1390_s23 = smov 0   ;;  %s1392_s24 = smov 0  }
   0x8   :  { %s1394_s25 = smov 0   ;;  %s1396_s26 = smov 0  }
   0x9 LB: > { %s1019_s27 = sadd.s32 4294967295, %s1341_s26   ;;  %s1020_s28 = sadd.s32 4294967294, %s1341_s26   ;;  %s1341_s26 = sphi %s1396_s26, %s27_s26   ;;  %s1337_s25 = sphi %s1394_s25, %s1875_s25   ;;  %s1333_s24 = sphi %s1392_s24, %s1874_s24   ;;  %s1329_s23 = sphi %s1390_s23, %s1873_s23   ;;  %s1325_s22 = sphi %s1388_s22, %s1872_s22   ;;  %s1321_s21 = sphi %s1386_s21, %s1871_s21  }
   0xa   : > { %p70_p0 = scmp.ne.s32.totalorder %s1325_s22, %s1321_s21  ;;  %p1420_p1 = scmp.eq.s32.totalorder %s1019_s27, 0 }
   0xb   : > { %p1424_p2 = scmp.eq.s32.totalorder %s1019_s27, 1  ;;  %p174_p3 = scmp.eq.s32.totalorder %s1020_s28, 1 }
   0xc   : > { %s1854_s29 = scalar_select %p1420_p1, 1, 0 }
   0xd   : > { %s1855_s30 = scalar_select %p1424_p2, 1, 0 }
   0xe   : > { %p1430_p4 = por %p1420_p1, %p70_p0  ;;  %p1021_p5 = scmp.ge.s32.totalorder %s1341_s26, 1 }
   0xf   : > { %p1435_p6 = por %p174_p3, %p70_p0  ;;  %p237_p7 = scmp.lt.s32.totalorder %s1341_s26, 3 }
  0x10   : > { %s1856_s7 = scalar_select %p1430_p4, 1, 0 }
  0x11   : > { %s1857_s8 = scalar_select %p1435_p6, 1, 0 }
  0x12   : > { %p1440_p8 = pnand %p1021_p5, %p237_p7  ;;  %s1343_s10 = smov [#allocation5]  }
  0x13   : > { %s253_s11 = sshll.u32 %s1343_s10, 4  ;;  %s46_s13 = sadd.s32 1, %s1337_s25  ;;  %s254_s11 = int_to_ptr.vmem [resolvable:$true] %s253_s11 }
  0x14   : > { %s1858_s9 = scalar_select %p1440_p8, 1, 0 }
  0x15   : > { %p1092_p9 = pneg %p1440_p8  ;;  %s1165_s16 = scalar_lea.hbm %s1842_s1, 4096 }
  0x16   : > { %p1166_p12 = scmp.ne.s32.totalorder %s1842_s1, %s1165_s16  ;;  %p1172_p5 = scmp.lt.u32.totalorder %s1165_s16, %s1842_s1 }
  0x17   : > { %p1449_p11 = pnand %p1092_p9, %p1420_p1 }
  0x19   : > { %p1167_p13 = pneg %p1449_p11 }
  0x1b   : > { %p1168_p0 = pnand %p1167_p13, %p1166_p12 }
  0x1d   : > { %p1169_p3 = pneg %p1168_p0 }
  0x1f   : > { %p1174_p7 = pnand %p1172_p5, %p1169_p3 }
  0x21   : > { %1177 = shalt.err (!%p1174_p7)
}
  0x22   : > { %s1178_s27 = scalar_lea.vmem %s254_s11, 4096  ;;  %p1186_p1 = scmp.lt.s32.totalorder %s254_s11, %s254_s11 }
  0x23   : > { %p1179_p9 = scmp.ne.s32.totalorder %s254_s11, %s1178_s27  ;;  %p1187_p4 = scmp.lt.s32.totalorder %s1178_s27, %s1178_s27 }
  0x25   : > { %p1181_p10 = pnand %p1179_p9, %p1167_p13  ;;  %p1188_p8 = por %p1187_p4, %p1186_p1 }
  0x27   : > { %p1182_p6 = pneg %p1181_p10 }
  0x29   : > { %p1189_p2 = pnand %p1188_p8, %p1182_p6 }
  0x2b   : > { %1192 = shalt.err (!%p1189_p2)
}
  0x2c   : > { %s1852_s28 = smov 256   ;;  %s1853_s10 = smov 16  }
  0x2d   : > { %1095 = dma.hbm_to_vmem [thread:$0]  (!%p1449_p11), %s1842_s1, 4096, %s254_s11, [#allocation6], %s1852_s28, %s1852_s28, %s1853_s10  }
  0x2e   : > { %p48_p1 = scmp.ge.s32.totalorder %s46_s13, 2  ;;  %s57_s16 = sadd.s32 1, %s1329_s23 }
  0x2f   : > { %p64_p2 = scmp.ne.s32.totalorder %s1329_s23, %s1325_s22  ;;  %p65_p4 = scmp.eq.s32.totalorder %s1341_s26, 0 }
  0x30   : > { %s1877_s13 = smov (%p48_p1, %s46_s13), 0  ;;  %p1861_p8 = scmp.ne.s32.totalorder %s1855_s30, 0 }
  0x31   : > { %p1479_p6 = por %p65_p4, %p64_p2  ;;  %s52_s18 = ssub.s32 %s1337_s25, %s1877_s13 }
  0x32   : > { %p1485_p10 = por %p1861_p8, %p64_p2  ;;  %p1108_p12 = scmp.lt.s32.totalorder %s1341_s26, 2 }
  0x33   : > { %p55_p11 = scmp.eq.s32.totalorder %s52_s18, 0  ;;  %s273_s11 = sand.u32 1, %s1329_s23  }
  0x34   : > { %s1024_s19 = sshll.u32 %s273_s11, 5  ;;  %s1043_s27 = sshll.u32 %s1337_s25, 9 }
  0x35   : > { %s1494_s20 = scalar_select %p55_p11, %s1329_s23, %s57_s16  }
  0x36   : > { %s1500_s28 = scalar_lea.hbm %s1841_s0, %s1043_s27  ;;  %s277_s30 = scalar_lea.vmem [#allocation2], %s1024_s19 }
  0x37   : > { %s287_s10 = sshll.u32 %s277_s30, 4  ;;  %p1506_p13 = pnand %p1108_p12, %p1479_p6  ;;  %s1502_s10 = int_to_ptr.vmem [resolvable:$true] %s287_s10 }
  0x38   : > { %s1510_s16 = scalar_lea.sflag [#allocation3], %s273_s11  ;;  %s1193_s14 = scalar_lea.hbm %s1500_s28, 512 }
  0x39   : > { %p1194_p0 = scmp.ne.s32.totalorder %s1500_s28, %s1193_s14  ;;  %p1195_p3 = pneg %p1506_p13 }
  0x3a   : > { %s1198_s17 = scalar_lea.hbm %s1841_s0, 1024  ;;  %p1199_p9 = scmp.lt.u32.totalorder %s1500_s28, %s1841_s0 }
  0x3b   : > { %p1196_p5 = pnand %p1195_p3, %p1194_p0  ;;  %p1200_p1 = scmp.lt.u32.totalorder %s1198_s17, %s1193_s14 }
  0x3c   : > { %p1202_p4 = scmp.lt.u32.totalorder %s1193_s14, %s1500_s28 }
  0x3d   : > { %p1197_p7 = pneg %p1196_p5  ;;  %p1201_p2 = por %p1200_p1, %p1199_p9 }
  0x3f   : > { %p1203_p6 = por %p1202_p4, %p1201_p2 }
  0x41   : > { %p1204_p8 = pnand %p1203_p6, %p1197_p7 }
  0x43   : > { %1207 = shalt.err (!%p1204_p8)
}
  0x44   : > { %s1208_s11 = scalar_lea.vmem %s1502_s10, 512  ;;  %s1346_s19 = smov [#allocation2]  }
  0x45   : > { %p1209_p12 = scmp.ne.s32.totalorder %s1502_s10, %s1208_s11  ;;  %s1213_s27 = sshll.u32 %s1346_s19, 4  ;;  %s1214_s27 = int_to_ptr.vmem [resolvable:$false] %s1213_s27 }
  0x46   : > { %s1215_s15 = scalar_lea.vmem %s1214_s27, 1024  ;;  %p1216_p5 = scmp.lt.s32.totalorder %s1502_s10, %s1214_s27 }
  0x47   : > { %p1211_p11 = pnand %p1209_p12, %p1195_p3  ;;  %p1217_p9 = scmp.lt.s32.totalorder %s1215_s15, %s1208_s11 }
  0x49   : > { %p1212_p0 = pneg %p1211_p11  ;;  %p1218_p1 = por %p1217_p9, %p1216_p5 }
  0x4b   : > { %p1219_p2 = pnand %p1218_p1, %p1212_p0 }
  0x4d   : > { %1222 = shalt.err (!%p1219_p2)
}
  0x4e   : > { %s1864_s14 = smov 16   ;;  %s1865_s17 = smov 256  }
  0x4f   : > { %1099 = dma.hbm_to_vmem [thread:$0]  (!%p1506_p13), %s1500_s28, 512, %s1502_s10, %s1510_s16, %s1865_s17, %s1865_s17, %s1864_s14  }
  0x50   : > { %p1866_p3 = scmp.ne.s32.totalorder %s1858_s9, 0 }
  0x51   : > { %s1544_s30 = sand.u32 (!%p1866_p3), 1, %s1325_s22   ;;  %p1867_p7 = scmp.ne.s32.totalorder (!%p1866_p3), %s1856_s7, 0 }
  0x52   : > { %299 = sbr.rel (%p1866_p3) target bundleno = 596 (0x254), region = 36  ;;  %s1028_s11 = sshll.u32 (!%p1866_p3), %s1544_s30, 5 }
  0x53   : > { %s302_s19 = scalar_lea.sflag (!%p1866_p3), [#allocation3], %s1544_s30  ;;  %s305_s27 = scalar_lea.vmem (!%p1866_p3), [#allocation2], %s1028_s11 }
  0x59   : > { %1304 = dma.done.wait (%p1867_p7), %s302_s19, 512  }
  0x5a   : > { %1306 = vsyncadd (%p1867_p7), %s302_s19, 4294966784  ;;  %p1868_p4 = scmp.ne.s32.totalorder %s1854_s29, 0 }
  0x5c   : > { %1308 = dma.done.wait (%p1868_p4), [#allocation6], 4096  }
  0x5d   : > { %1310 = vsyncadd (%p1868_p4), [#allocation6], 4294963200  ;;  %v1347_v0 = vmov 0.0   ;;  %v1348_v1 = vmov 0   ;;  %v370_v2 = vld [vmem:[%s305_s27 + $0x8] sm:$0xff]  ;;  %v372_v3 = vld [vmem:[%s305_s27 + $0x18] sm:$0xff] }
  0x5e   : > { %456 = vmatprep.mubr.f32.mxu0 %v1347_v0  ;;  %1164 = vset.pattern.permute.xlu0 %v1348_v1  ;;  %v369_v4 = vld [vmem:[%s305_s27] sm:$0xff]  ;;  %v1046_v5 = vpack.c.bf16 %v372_v3, %v370_v2  ;;  %v371_v6 = vld [vmem:[%s305_s27 + $0x10] sm:$0xff]  ;;  %v474_v9 = vld [vmem:[#allocation5 + $0x8] sm:$0xff]  ;;  %vm385_vm0 = vcmask 130048   ;;  %s1030_s14 = sshll.u32 %s1544_s30, 4  ;;  %p358_p13 = scmp.lt.s32.totalorder %s1333_s24, 1 }
  0x5f   : > { %v1048_v7 = vpack.c.bf16 %v371_v6, %v369_v4  ;;  %v373_v8 = vld [vmem:[%s1844_s3] sm:$0xff]  ;;  %v1560_v10 = vld [vmem:[#allocation5 + $0x18] sm:$0xff]  ;;  %v374_v12 = vld [vmem:[%s1844_s3 + $0x8] sm:$0xff]  ;;  %569 = vmatprep.mubr.f32.mxu1 %v474_v9  ;;  %s1634_s17 = scalar_lea.vmem [#allocation7], %s1030_s14  ;;  %vm724_vm1 = vcmask 64512   ;;  %s1045_s29 = sshll.u32 %s1333_s24, 8 }
  0x60   : > { %1047 = vmatprep.subr.bf16.mxu0 %v1046_v5  ;;  %377 = vperm.xlu0 %1164, %v373_v8   ;;  %v367_v11 = vld [vmem:[%s1843_s2] sm:$0xff]  ;;  %v1050_v13 = vpack.c.bf16 %v1560_v10, %v474_v9  ;;  %v1571_v15 = vld [vmem:[#allocation5 + $0x10] sm:$0xff]  ;;  %v1573_v16 = vld [vmem:[#allocation5 + $0x28] sm:$0xff]  ;;  %s359_s11 = scalar_select %p358_p13, %s1333_s24, 1 }
  0x61   : > { %1049 = vmatpush1.bf16.msra.mxu0 %v1048_v7  ;;  %v1569_v14 = vld [vmem:[#allocation5] sm:$0xff]  ;;  %v1575_v17 = vld [vmem:[#allocation5 + $0x38] sm:$0xff]  ;;  %v368_v18 = vld [vmem:[%s1843_s2 + $0x8] sm:$0xff]  ;;  %s826_s28 = sshll.u32 %s1634_s17, 4  ;;  %s1719_s16 = scalar_lea.hbm %s1845_s4, %s1045_s29  ;;  %s827_s28 = int_to_ptr.vmem [resolvable:$true] %s826_s28 }
  0x62   : > { %1051 = vmatprep.subr.bf16.mxu0 %v1050_v13  ;;  %v1052_v19 = vpack.c.bf16 %v1571_v15, %v1569_v14  ;;  %v1054_v20 = vpack.c.bf16 %v1575_v17, %v1573_v16  ;;  %v1585_v21 = vld [vmem:[#allocation5 + $0x20] sm:$0xff]  ;;  %v1587_v22 = vld [vmem:[#allocation5 + $0x30] sm:$0xff]  ;;  %v1589_v23 = vld [vmem:[#allocation5 + $0x48] sm:$0xff]  ;;  %s1044_s19 = sshll.u32 %s359_s11, 7  ;;  %s795_s15 = scalar_lea.sflag [#allocation4], %s1544_s30 }
  0x63   : > { %v1591_v24 = vld [vmem:[#allocation5 + $0x58] sm:$0xff]  ;;  %v1056_v25 = vpack.c.bf16 %v1587_v22, %v1585_v21  ;;  %v1597_v27 = vld [vmem:[#allocation5 + $0x40] sm:$0xff]  ;;  %v1599_v28 = vld [vmem:[#allocation5 + $0x50] sm:$0xff]  ;;  %s1664_s7 = scalar_lea.vmem %s1846_s5, %s1044_s19  ;;  %s1223_s14 = scalar_lea.vmem %s827_s28, 256 }
  0x64   : > { %1034 = vmatmul.mubr.msk.f32.vlgmr.msra.gmra.mrb[0].mxu0 %vm385_vm0, %v367_v11  ;;  %382 = vperm.xlu0 %1164, %v374_v12   ;;  %v1058_v26 = vpack.c.bf16 %v1591_v24, %v1589_v23  ;;  %v1601_v29 = vld [vmem:[#allocation5 + $0x68] sm:$0xff]  ;;  %v1603_v30 = vld [vmem:[#allocation5 + $0x78] sm:$0xff]  ;;  %v1060_v31 = vpack.c.bf16 %v1599_v28, %v1597_v27  ;;  %v1609_v33 = vld [vmem:[#allocation5 + $0x60] sm:$0xff]  ;;  %725 = vst.msk [vmem:[%s1664_s7] sm:$0xff] %vm724_vm1, %v1347_v0  ;;  %p1224_p6 = scmp.ne.s32.totalorder %s827_s28, %s1223_s14  ;;  %s1349_s11 = smov [#allocation7]  }
  0x65   : > { %462 = vmatprep.mubr.f32.mxu0 %v1347_v0  ;;  %v1062_v32 = vpack.c.bf16 %v1603_v30, %v1601_v29  ;;  %v1611_v34 = vld [vmem:[#allocation5 + $0x70] sm:$0xff]  ;;  %v1613_v35 = vld [vmem:[#allocation5 + $0x88] sm:$0xff]  ;;  %v1615_v36 = vld [vmem:[#allocation5 + $0x98] sm:$0xff]  ;;  %726 = vst.msk [vmem:[%s1664_s7 + $0x8] sm:$0xff] %vm724_vm1, %v1347_v0  ;;  %s1227_s19 = sshll.u32 %s1349_s11, 4  ;;  %s1228_s19 = int_to_ptr.vmem [resolvable:$false] %s1227_s19 }
  0x66   : > { %v1064_v37 = vpack.c.bf16 %v1611_v34, %v1609_v33  ;;  %v1066_v38 = vpack.c.bf16 %v1615_v36, %v1613_v35  ;;  %v1621_v39 = vld [vmem:[#allocation5 + $0x80] sm:$0xff]  ;;  %v1623_v40 = vld [vmem:[#allocation5 + $0x90] sm:$0xff]  ;;  %v1625_v41 = vld [vmem:[#allocation5 + $0xa8] sm:$0xff]  ;;  %727 = vst.msk [vmem:[%s1664_s7 + $0x10] sm:$0xff] %vm724_vm1, %v1347_v0  ;;  %p1225_p8 = pnand %p1224_p6, %p1485_p10  ;;  %s1229_s27 = scalar_lea.vmem %s1228_s19, 512 }
  0x67   : > { %v1627_v42 = vld [vmem:[#allocation5 + $0xb8] sm:$0xff]  ;;  %v1068_v43 = vpack.c.bf16 %v1623_v40, %v1621_v39  ;;  %v493_v45 = vld [vmem:[#allocation5 + $0xa0] sm:$0xff]  ;;  %v495_v46 = vld [vmem:[#allocation5 + $0xb0] sm:$0xff]  ;;  %728 = vst.msk [vmem:[%s1664_s7 + $0x18] sm:$0xff] %vm724_vm1, %v1347_v0  ;;  %p1230_p11 = scmp.lt.s32.totalorder %s827_s28, %s1228_s19  ;;  %p1231_p0 = scmp.lt.s32.totalorder %s1229_s27, %s1223_s14 }
  0x68   : > { %1035 = vmatmul.mubr.msk.f32.gmra.mrb[2].mxu0 %vm385_vm0, %v368_v18  ;;  %v1070_v44 = vpack.c.bf16 %v1627_v42, %v1625_v41  ;;  %v498_v47 = vld [vmem:[#allocation5 + $0xc8] sm:$0xff]  ;;  %v500_v48 = vld [vmem:[#allocation5 + $0xd8] sm:$0xff]  ;;  %v1072_v49 = vpack.c.bf16 %v495_v46, %v493_v45  ;;  %v497_v51 = vld [vmem:[#allocation5 + $0xc0] sm:$0xff]  ;;  %729 = vst.msk [vmem:[%s1664_s7 + $0x20] sm:$0xff] %vm724_vm1, %v1347_v0  ;;  %p1226_p12 = pneg %p1225_p8 }
  0x69   : > { %v1074_v50 = vpack.c.bf16 %v500_v48, %v498_v47  ;;  %v499_v52 = vld [vmem:[#allocation5 + $0xd0] sm:$0xff]  ;;  %v502_v54 = vld [vmem:[#allocation5 + $0xe8] sm:$0xff]  ;;  %v504_v55 = vld [vmem:[#allocation5 + $0xf8] sm:$0xff]  ;;  %730 = vst.msk [vmem:[%s1664_s7 + $0x28] sm:$0xff] %vm724_vm1, %v1347_v0  ;;  %p1232_p5 = por %p1231_p0, %p1230_p11 }
  0x6a   : > { %1053 = vmatpush1.bf16.xpose.msra.mxu0 %v1052_v19  ;;  %v1076_v53 = vpack.c.bf16 %v499_v52, %v497_v51  ;;  %v1078_v56 = vpack.c.bf16 %v504_v55, %v502_v54  ;;  %v501_v57 = vld [vmem:[#allocation5 + $0xe0] sm:$0xff]  ;;  %v503_v58 = vld [vmem:[#allocation5 + $0xf0] sm:$0xff]  ;;  %731 = vst.msk [vmem:[%s1664_s7 + $0x30] sm:$0xff] %vm724_vm1, %v1347_v0  ;;  %732 = vst.msk [vmem:[%s1664_s7 + $0x38] sm:$0xff] %vm724_vm1, %v1347_v0 }
  0x6b   : > { %1055 = vmatprep.subr.bf16.mxu0 %v1054_v20  ;;  %v1080_v59 = vpack.c.bf16 %v503_v58, %v501_v57  ;;  %733 = vst.msk [vmem:[%s1664_s7 + $0x40] sm:$0xff] %vm724_vm1, %v1347_v0  ;;  %734 = vst.msk [vmem:[%s1664_s7 + $0x48] sm:$0xff] %vm724_vm1, %v1347_v0  ;;  %p1233_p9 = pnand %p1232_p5, %p1226_p12 }
  0x6c   : > { %735 = vst.msk [vmem:[%s1664_s7 + $0x50] sm:$0xff] %vm724_vm1, %v1347_v0  ;;  %736 = vst.msk [vmem:[%s1664_s7 + $0x58] sm:$0xff] %vm724_vm1, %v1347_v0 }
  0x6d   : > { %737 = vst.msk [vmem:[%s1664_s7 + $0x60] sm:$0xff] %vm724_vm1, %v1347_v0  ;;  %738 = vst.msk [vmem:[%s1664_s7 + $0x68] sm:$0xff] %vm724_vm1, %v1347_v0 }
  0x6e   : > { %739 = vst.msk [vmem:[%s1664_s7 + $0x70] sm:$0xff] %vm724_vm1, %v1347_v0  ;;  %740 = vst.msk [vmem:[%s1664_s7 + $0x78] sm:$0xff] %vm724_vm1, %v1347_v0 }
  0x72   : > { %1057 = vmatpush1.bf16.xpose.msra.mxu0 %v1056_v25 }
  0x73   : > { %1059 = vmatprep.subr.bf16.mxu0 %v1058_v26 }
  0x7a   : > { %1061 = vmatpush1.bf16.xpose.msra.mxu0 %v1060_v31 }
  0x7b   : > { %1063 = vmatprep.subr.bf16.mxu0 %v1062_v32 }
  0x82   : > { %1065 = vmatpush1.bf16.xpose.msra.mxu0 %v1064_v37 }
  0x83   : > { %1067 = vmatprep.subr.bf16.mxu0 %v1066_v38 }
  0x8a   : > { %1069 = vmatpush1.bf16.xpose.msra.mxu0 %v1068_v43 }
  0x8b   : > { %1071 = vmatprep.subr.bf16.mxu0 %v1070_v44 }
  0x92   : > { %1073 = vmatpush1.bf16.xpose.msra.mxu0 %v1072_v49 }
  0x93   : > { %1075 = vmatprep.subr.bf16.mxu0 %v1074_v50 }
  0x9a   : > { %1077 = vmatpush1.bf16.xpose.msra.mxu0 %v1076_v53 }
  0x9b   : > { %1079 = vmatprep.subr.bf16.mxu0 %v1078_v56 }
  0xa2   : > { %1081 = vmatpush1.bf16.xpose.msra.mxu0 %v1080_v59 }
  0xdf   : > { %v378_v60 = vpop.permute.xlu0 %377 }
  0xe3   : > { %v383_v5 = vpop.permute.xlu0 %382 }
 0x137   : > { %v458_v61 = vpop.f32.mrb[0].mxu0 }
 0x138   : > { %v459_v62 = vadd.f32 %v458_v61, %v378_v60  ;;  %v460_v63 = vpop.f32.mrb[1].mxu0 }
 0x139   : > { %v461_v1 = vadd.f32 %v460_v63, %v378_v60 }
 0x13a   : > { %v469_v2 = vmax.f32 %v459_v62, 0.0 }
 0x13b   : > { %v470_v3 = vmax.f32 %v461_v1, 0.0  ;;  %v464_v4 = vpop.f32.mrb[2].mxu0 }
 0x13c   : > { %471 = vst [vmem:[%s1634_s17] sm:$0xff] %v469_v2  ;;  %v466_v6 = vpop.f32.mrb[3].mxu0  ;;  %v465_v8 = vadd.f32 %v464_v4, %v383_v5 }
 0x13d   : > { %472 = vst [vmem:[%s1634_s17 + $0x8] sm:$0xff] %v470_v3  ;;  %v467_v7 = vadd.f32 %v466_v6, %v383_v5  ;;  %505 = vmatprep.subr.mxu1 %v470_v3 }
 0x13e   : > { %506 = vmatpush1.xpose.msra.mxu1 %v469_v2 }
 0x13f   : > { %714 = vmatprep.mubr.f32.mxu0 %v467_v7 }
 0x140   : > { %715 = vmatmul.mubr.f32.vlgmr.msra.gmra.mrb[4].mxu0 %v465_v8 }
 0x141   : > { %570 = vmatmul.mubr.f32.vlgmr.msra.gmra.mrb[0].mxu1 %v1569_v14 }
 0x142   : > { %574 = vmatprep.mubr.f32.mxu1 %v1560_v10 }
 0x145   : > { %575 = vmatmul.mubr.f32.gmra.mrb[2].mxu1 %v1571_v15 }
 0x146   : > { %579 = vmatprep.mubr.f32.mxu1 %v1573_v16 }
 0x149   : > { %580 = vmatmul.mubr.f32.gmra.mrb[4].mxu1 %v1585_v21 }
 0x14a   : > { %584 = vmatprep.mubr.f32.mxu1 %v1575_v17 }
 0x14d   : > { %585 = vmatmul.mubr.f32.gmra.mrb[6].mxu1 %v1587_v22 }
 0x14e   : > { %589 = vmatprep.mubr.f32.mxu1 %v1589_v23 }
 0x151   : > { %590 = vmatmul.mubr.f32.gmra.mrb[8].mxu1 %v1597_v27 }
 0x152   : > { %594 = vmatprep.mubr.f32.mxu1 %v1591_v24 }
 0x155   : > { %595 = vmatmul.mubr.f32.gmra.mrb[10].mxu1 %v1599_v28 }
 0x156   : > { %599 = vmatprep.mubr.f32.mxu1 %v1601_v29 }
 0x159   : > { %600 = vmatmul.mubr.f32.gmra.mrb[12].mxu1 %v1609_v33 }
 0x15a   : > { %604 = vmatprep.mubr.f32.mxu1 %v1603_v30 }
 0x15d   : > { %605 = vmatmul.mubr.f32.gmra.mrb[14].mxu1 %v1611_v34 }
 0x15e   : > { %609 = vmatprep.mubr.f32.mxu1 %v1613_v35 }
 0x161   : > { %610 = vmatmul.mubr.f32.gmra.mrb[16].mxu1 %v1621_v39 }
 0x162   : > { %614 = vmatprep.mubr.f32.mxu1 %v1615_v36 }
 0x165   : > { %615 = vmatmul.mubr.f32.gmra.mrb[18].mxu1 %v1623_v40 }
 0x166   : > { %619 = vmatprep.mubr.f32.mxu1 %v1625_v41 }
 0x169   : > { %620 = vmatmul.mubr.f32.gmra.mrb[20].mxu1 %v493_v45 }
 0x16a   : > { %624 = vmatprep.mubr.f32.mxu1 %v1627_v42 }
 0x16d   : > { %625 = vmatmul.mubr.f32.gmra.mrb[22].mxu1 %v495_v46 }
 0x16e   : > { %629 = vmatprep.mubr.f32.mxu1 %v498_v47 }
 0x171   : > { %630 = vmatmul.mubr.f32.gmra.mrb[24].mxu1 %v497_v51 }
 0x172   : > { %634 = vmatprep.mubr.f32.mxu1 %v500_v48 }
 0x175   : > { %635 = vmatmul.mubr.f32.gmra.mrb[26].mxu1 %v499_v52 }
 0x176   : > { %639 = vmatprep.mubr.f32.mxu1 %v502_v54 }
 0x179   : > { %640 = vmatmul.mubr.f32.gmra.mrb[28].mxu1 %v501_v57 }
 0x17a   : > { %644 = vmatprep.mubr.f32.mxu1 %v504_v55 }
 0x17d   : > { %645 = vmatmul.mubr.f32.gmra.mrb[30].mxu1 %v503_v58 }
 0x17e   : > { %1236 = shalt.err (!%p1233_p9)
}
 0x17f   : > { %s1237_s17 = scalar_lea.hbm %s1719_s16, 256  ;;  %s1241_s10 = scalar_lea.hbm %s1845_s4, 512 }
 0x180   : > { %p1238_p1 = scmp.ne.s32.totalorder %s1719_s16, %s1237_s17  ;;  %p1242_p7 = scmp.lt.u32.totalorder %s1719_s16, %s1845_s4 }
 0x181   : > { %p1243_p4 = scmp.lt.u32.totalorder %s1241_s10, %s1237_s17  ;;  %p1245_p6 = scmp.lt.u32.totalorder %s1237_s17, %s1719_s16 }
 0x182   : > { %p1239_p2 = pnand %p1238_p1, %p1485_p10 }
 0x183   : > { %p1244_p13 = por %p1243_p4, %p1242_p7 }
 0x184   : > { %p1240_p3 = pneg %p1239_p2 }
 0x185   : > { %p1246_p8 = por %p1245_p6, %p1244_p13 }
 0x187   : > { %p1247_p12 = pnand %p1246_p8, %p1240_p3 }
 0x189   : > { %1250 = shalt.err (!%p1247_p12)
}
 0x18a   : > { %1088 = dma.vmem_to_hbm [thread:$0]  (%p1485_p10), %s827_s28, 256, %s1719_s16, %s795_s15   ;;  %v742_v0 = vld [vmem:[%s1664_s7] sm:$0xff]  ;;  %v743_v14 = vld [vmem:[%s1664_s7 + $0x8] sm:$0xff] }
 0x18b   : > { %s1031_s14 = sshll.u32 %s1544_s30, 3  ;;  %s1040_s19 = sshll.u32 %s1333_s24, 7 }
 0x18c   : > { %s351_s27 = scalar_lea.vmem [#allocation8], %s1031_s14  ;;  %s1745_s10 = scalar_lea.hbm %s1847_s6, %s1040_s19 }
 0x18d   : > { %s843_s9 = sshll.u32 %s351_s27, 4  ;;  %s809_s24 = scalar_lea.sflag [#allocation9], %s1544_s30  ;;  %s1747_s9 = int_to_ptr.vmem [resolvable:$true] %s843_s9 }
 0x18e   : > { %s1251_s28 = scalar_lea.vmem %s1747_s9, 128  ;;  %s1350_s16 = smov [#allocation8]  }
 0x18f   : > { %p1252_p11 = scmp.ne.s32.totalorder %s1747_s9, %s1251_s28  ;;  %s1255_s15 = sshll.u32 %s1350_s16, 4  ;;  %s1256_s15 = int_to_ptr.vmem [resolvable:$false] %s1255_s15 }
 0x190   : > { %s1257_s18 = scalar_lea.vmem %s1256_s15, 256  ;;  %p1258_p9 = scmp.lt.s32.totalorder %s1747_s9, %s1256_s15 }
 0x191   : > { %p1253_p0 = pnand %p1252_p11, %p1485_p10  ;;  %p1259_p1 = scmp.lt.s32.totalorder %s1257_s18, %s1251_s28 }
 0x193   : > { %p1254_p5 = pneg %p1253_p0  ;;  %p1260_p2 = por %p1259_p1, %p1258_p9 }
 0x195   : > { %p1261_p3 = pnand %p1260_p2, %p1254_p5 }
 0x213   : > { %v716_v9 = vpop.f32.mrb[4].mxu0 }
 0x214   : > { %v571_v10 = vpop.f32.mrb[0].mxu1  ;;  %v718_v11 = vpop.f32.mrb[5].mxu0  ;;  %793 = vst [vmem:[%s351_s27] sm:$0xff] %v716_v9 }
 0x215   : > { %v758_v12 = vadd.f32 %v742_v0, %v571_v10  ;;  %v573_v13 = vpop.f32.mrb[1].mxu1 }
 0x217   : > { %775 = vst.msk [vmem:[%s1664_s7] sm:$0xff] %vm724_vm1, %v758_v12 }
 0x218   : > { %1264 = shalt.err (!%p1261_p3)
}
 0x219   : > { %s1265_s30 = scalar_lea.hbm %s1745_s10, 128  ;;  %s1269_s19 = scalar_lea.hbm %s1847_s6, 256 }
 0x21a   : > { %p1266_p7 = scmp.ne.s32.totalorder %s1745_s10, %s1265_s30  ;;  %p1270_p6 = scmp.lt.u32.totalorder %s1745_s10, %s1847_s6 }
 0x21b   : > { %p1271_p8 = scmp.lt.u32.totalorder %s1269_s19, %s1265_s30  ;;  %p1273_p11 = scmp.lt.u32.totalorder %s1265_s30, %s1745_s10 }
 0x21c   : > { %p1267_p4 = pnand %p1266_p7, %p1485_p10 }
 0x21d   : > { %p1272_p12 = por %p1271_p8, %p1270_p6 }
 0x21e   : > { %p1268_p13 = pneg %p1267_p4 }
 0x21f   : > { %p1274_p0 = por %p1273_p11, %p1272_p12 }
 0x221   : > { %p1275_p5 = pnand %p1274_p0, %p1268_p13 }
 0x223   : > { %1278 = shalt.err (!%p1275_p5)
}
 0x224   : > { %1089 = dma.vmem_to_hbm [thread:$0]  (%p1485_p10), %s1747_s9, 128, %s1745_s10, %s809_s24   ;;  %v576_v15 = vpop.f32.mrb[2].mxu1  ;;  %v744_v18 = vld [vmem:[%s1664_s7 + $0x10] sm:$0xff]  ;;  %v745_v22 = vld [vmem:[%s1664_s7 + $0x18] sm:$0xff]  ;;  %v746_v26 = vld [vmem:[%s1664_s7 + $0x20] sm:$0xff] }
 0x225   : > { %v759_v16 = vadd.f32 %v743_v14, %v576_v15  ;;  %v578_v17 = vpop.f32.mrb[3].mxu1  ;;  %v747_v30 = vld [vmem:[%s1664_s7 + $0x28] sm:$0xff]  ;;  %v748_v34 = vld [vmem:[%s1664_s7 + $0x30] sm:$0xff]  ;;  %v749_v38 = vld [vmem:[%s1664_s7 + $0x38] sm:$0xff] }
 0x226   : > { %v581_v19 = vpop.f32.mrb[4].mxu1  ;;  %v750_v42 = vld [vmem:[%s1664_s7 + $0x40] sm:$0xff]  ;;  %v751_v46 = vld [vmem:[%s1664_s7 + $0x48] sm:$0xff]  ;;  %v752_v50 = vld [vmem:[%s1664_s7 + $0x50] sm:$0xff] }
 0x227   : > { %776 = vst.msk [vmem:[%s1664_s7 + $0x8] sm:$0xff] %vm724_vm1, %v759_v16  ;;  %v760_v20 = vadd.f32 %v744_v18, %v581_v19  ;;  %v583_v21 = vpop.f32.mrb[5].mxu1  ;;  %v753_v54 = vld [vmem:[%s1664_s7 + $0x58] sm:$0xff]  ;;  %v754_v58 = vld [vmem:[%s1664_s7 + $0x60] sm:$0xff]  ;;  %v755_v62 = vld [vmem:[%s1664_s7 + $0x68] sm:$0xff] }
 0x228   : > { %v586_v23 = vpop.f32.mrb[6].mxu1  ;;  %v756_v3 = vld [vmem:[%s1664_s7 + $0x70] sm:$0xff]  ;;  %v757_v7 = vld [vmem:[%s1664_s7 + $0x78] sm:$0xff] }
 0x229   : > { %777 = vst.msk [vmem:[%s1664_s7 + $0x10] sm:$0xff] %vm724_vm1, %v760_v20  ;;  %v761_v24 = vadd.f32 %v745_v22, %v586_v23  ;;  %v588_v25 = vpop.f32.mrb[7].mxu1 }
 0x22a   : > { %v591_v27 = vpop.f32.mrb[8].mxu1 }
 0x22b   : > { %778 = vst.msk [vmem:[%s1664_s7 + $0x18] sm:$0xff] %vm724_vm1, %v761_v24  ;;  %v762_v28 = vadd.f32 %v746_v26, %v591_v27  ;;  %v593_v29 = vpop.f32.mrb[9].mxu1 }
 0x22c   : > { %v596_v31 = vpop.f32.mrb[10].mxu1 }
 0x22d   : > { %779 = vst.msk [vmem:[%s1664_s7 + $0x20] sm:$0xff] %vm724_vm1, %v762_v28  ;;  %v763_v32 = vadd.f32 %v747_v30, %v596_v31  ;;  %v598_v33 = vpop.f32.mrb[11].mxu1 }
 0x22e   : > { %v601_v35 = vpop.f32.mrb[12].mxu1 }
 0x22f   : > { %780 = vst.msk [vmem:[%s1664_s7 + $0x28] sm:$0xff] %vm724_vm1, %v763_v32  ;;  %v764_v36 = vadd.f32 %v748_v34, %v601_v35  ;;  %v603_v37 = vpop.f32.mrb[13].mxu1 }
 0x230   : > { %v606_v39 = vpop.f32.mrb[14].mxu1 }
 0x231   : > { %781 = vst.msk [vmem:[%s1664_s7 + $0x30] sm:$0xff] %vm724_vm1, %v764_v36  ;;  %v765_v40 = vadd.f32 %v749_v38, %v606_v39  ;;  %v608_v41 = vpop.f32.mrb[15].mxu1 }
 0x233   : > { %782 = vst.msk [vmem:[%s1664_s7 + $0x38] sm:$0xff] %vm724_vm1, %v765_v40 }
 0x234   : > { %v611_v43 = vpop.f32.mrb[16].mxu1 }
 0x235   : > { %v766_v44 = vadd.f32 %v750_v42, %v611_v43  ;;  %v613_v45 = vpop.f32.mrb[17].mxu1 }
 0x237   : > { %783 = vst.msk [vmem:[%s1664_s7 + $0x40] sm:$0xff] %vm724_vm1, %v766_v44 }
 0x238   : > { %v616_v47 = vpop.f32.mrb[18].mxu1 }
 0x239   : > { %v767_v48 = vadd.f32 %v751_v46, %v616_v47  ;;  %v618_v49 = vpop.f32.mrb[19].mxu1 }
 0x23b   : > { %784 = vst.msk [vmem:[%s1664_s7 + $0x48] sm:$0xff] %vm724_vm1, %v767_v48 }
 0x23c   : > { %v621_v51 = vpop.f32.mrb[20].mxu1 }
 0x23d   : > { %v768_v52 = vadd.f32 %v752_v50, %v621_v51  ;;  %v623_v53 = vpop.f32.mrb[21].mxu1 }
 0x23f   : > { %785 = vst.msk [vmem:[%s1664_s7 + $0x50] sm:$0xff] %vm724_vm1, %v768_v52 }
 0x240   : > { %v626_v55 = vpop.f32.mrb[22].mxu1 }
 0x241   : > { %v769_v56 = vadd.f32 %v753_v54, %v626_v55  ;;  %v628_v57 = vpop.f32.mrb[23].mxu1 }
 0x243   : > { %786 = vst.msk [vmem:[%s1664_s7 + $0x58] sm:$0xff] %vm724_vm1, %v769_v56 }
 0x244   : > { %v631_v59 = vpop.f32.mrb[24].mxu1 }
 0x245   : > { %v770_v60 = vadd.f32 %v754_v58, %v631_v59  ;;  %v633_v61 = vpop.f32.mrb[25].mxu1 }
 0x247   : > { %787 = vst.msk [vmem:[%s1664_s7 + $0x60] sm:$0xff] %vm724_vm1, %v770_v60 }
 0x248   : > { %v636_v63 = vpop.f32.mrb[26].mxu1 }
 0x249   : > { %v771_v1 = vadd.f32 %v755_v62, %v636_v63  ;;  %v638_v2 = vpop.f32.mrb[27].mxu1 }
 0x24b   : > { %788 = vst.msk [vmem:[%s1664_s7 + $0x68] sm:$0xff] %vm724_vm1, %v771_v1 }
 0x24c   : > { %v641_v4 = vpop.f32.mrb[28].mxu1 }
 0x24d   : > { %v772_v5 = vadd.f32 %v756_v3, %v641_v4  ;;  %v643_v6 = vpop.f32.mrb[29].mxu1 }
 0x24f   : > { %789 = vst.msk [vmem:[%s1664_s7 + $0x70] sm:$0xff] %vm724_vm1, %v772_v5 }
 0x250   : > { %v646_v8 = vpop.f32.mrb[30].mxu1 }
 0x251   : > { %v773_v0 = vadd.f32 %v757_v7, %v646_v8  ;;  %v648_v9 = vpop.f32.mrb[31].mxu1 }
 0x253   : > { %790 = vst.msk [vmem:[%s1664_s7 + $0x78] sm:$0xff] %vm724_vm1, %v773_v0 }
 0x254 PF: > { %s855_s12 = sand.u32 1, %s1321_s21   ;;  %p1869_p10 = scmp.ne.s32.totalorder %s1857_s8, 0 }
 0x255   : > { %p1870_p9 = scmp.ge.s32.totalorder %s1341_s26, 2  ;;  %s856_s9 = scalar_lea.sflag [#allocation4], %s855_s12 }
 0x257   : > { %p1101_p1 = pnand %p1870_p9, %p1869_p10 }
 0x259   : > { %1312 = dma.done.wait (!%p1101_p1), %s856_s9, 256  }
 0x25a   : > { %1314 = vsyncadd (!%p1101_p1), %s856_s9, 4294967040  ;;  %s877_s29 = scalar_lea.sflag [#allocation9], %s855_s12 }
 0x25b   : > { %1316 = dma.done.wait (!%p1101_p1), %s877_s29, 128  }
 0x25c   : > { %1318 = vsyncadd (!%p1101_p1), %s877_s29, 4294967168  ;;  %s27_s26 = sadd.s32 1, %s1341_s26   ;;  %s1871_s21 = smov %s1325_s22 }
 0x25d   : > { %p24_p2 = scmp.ge.s32.totalorder %s27_s26, 4   ;;  %s1872_s22 = smov %s1329_s23 }
 0x25e   : > { %s1873_s23 = smov %s1494_s20  ;;  %s1874_s24 = smov %s1337_s25 }
 0x25f   : > { %s1875_s25 = smov %s1877_s13  ;;  %26 = sbr.rel (!%p24_p2) target bundleno = 9 (0x9), region = 119 }
 0x266   :  { %882 = vsyncpa [#allocation3], 1 }
 0x267   :  { %884 = vsyncpa [#allocation3 + $0x1], 1 }
 0x268   :  { %885 = vsyncpa [#allocation6], 1 }
 0x269   :  { %886 = vsyncpa [#allocation4], 1 }
 0x26a   :  { %888 = vsyncpa [#allocation4 + $0x1], 1 }
 0x26b   :  { %889 = vsyncpa [#allocation9], 1 }
 0x26c   :  { %891 = vsyncpa [#allocation9 + $0x1], 1 }

</bundles_post_ra>
